<compile_context>
chip_gen: v7x
topology: tpu7x:2x2x1
jax: 0.10.0
libtpu: 0.0.40
codegen_flags: <defaults>
</compile_context>

<pallas_src>
import functools

import jax
import jax.numpy as jnp
from jax.experimental import pallas as pl
from jax.experimental.pallas import tpu as pltpu


def _round_up(n, m):
    return ((n + m - 1) // m) * m


def dann_loss_kernel(x_ref, w1_ref, b1_ref, w2_ref, b2_ref, y_ref, out_ref, *,
                     batch_size, block_b):
    pid = pl.program_id(0)

    # In-kernel bf16 cast of the feature tile (MXU-native multiply, f32 accum).
    xb = x_ref[...].astype(jnp.bfloat16)                      # (block_b, D)

    # Hidden layer, transposed (A @ B^T, i.e. the q@k^T MXU pattern):
    #   hT[h, b] = sum_d w1T[h, d] * x[b, d]                  -> (H, block_b)
    hT = jax.lax.dot_general(
        w1_ref[...], xb,
        dimension_numbers=(((1,), (1,)), ((), ())),
        preferred_element_type=jnp.float32)
    hT = jnp.maximum(hT + b1_ref[...], 0.0)                   # b1 (H,1) lane-bcast

    # Output layer (H -> 1): VPU multiply by the (H, 1) w2 column + XLU
    # sublane reduce.  z is (1, block_b): full 128-lane density for the BCE.
    z = jnp.sum(hT * w2_ref[...], axis=0, keepdims=True) + b2_ref[0, 0]

    y = y_ref[...]                                            # (1, block_b) f32

    # Numerically-stable BCE-with-logits (same formula PyTorch uses), in f32:
    #   max(z, 0) - z*y + log(1 + exp(-|z|))
    per_elem = jnp.maximum(z, 0.0) - z * y + jnp.log1p(jnp.exp(-jnp.abs(z)))

    # Mask padded tail columns of the last block (where() fully overrides any
    # garbage / NaN coming from padded feature rows or labels).
    col = pid * block_b + jax.lax.broadcasted_iota(jnp.int32, per_elem.shape, 1)
    out_ref[...] = jnp.where(col < batch_size, per_elem, 0.0)


def domain_adversarial_loss(features, labels, w1, b1, w2, b2, *, block_b=None):
    """features: (B, D) f32; labels: (B,); w1: (D, H); b1: (H,); w2: (H, 1); b2: (1,).

    Weights use the [in_features, out_features] layout (transposed from
    PyTorch nn.Linear).  Returns the scalar f32 BCE-with-logits loss (mean).
    """
    B, D = features.shape
    H = w1.shape[1]

    if block_b is None:
        # Single block for small batches; otherwise lane-aligned tiles capped
        # at 4096 rows (sweep 4096-8192 if per-step overhead still dominates).
        block_b = B if B <= 1024 else min(4096, _round_up(B, 128))
    grid_n = pl.cdiv(B, block_b)
    if grid_n > 1:
        # Lane-dense labels/output tiles require a 128-aligned block.
        assert block_b % 128 == 0, "block_b must be a multiple of 128 when tiled"
    padded_b = grid_n * block_b

    # Weight / bias relayouts: tiny, one-time, B-independent.
    # TODO(synk): if the upstream producer can emit features as (D, B) in HBM,
    # the matmul could consume a non-transposed stationary operand; not needed
    # at these sizes (MXU has large slack).
    w1_hd = w1.T.astype(jnp.bfloat16)                       # (H, D) MXU lhs
    b1_col = b1.reshape(H, 1).astype(jnp.float32)           # (H, 1)
    w2_col = w2.reshape(H, 1).astype(jnp.float32)           # (H, 1)
    b2_s = b2.reshape(1, 1).astype(jnp.float32)             # SMEM scalar
    y_row = labels.astype(jnp.float32).reshape(1, B)        # lane-dense labels

    kernel = functools.partial(dann_loss_kernel, batch_size=B, block_b=block_b)

    per_elem = pl.pallas_call(
        kernel,
        out_shape=jax.ShapeDtypeStruct((1, padded_b), jnp.float32),
        grid=(grid_n,),
        in_specs=[
            pl.BlockSpec((block_b, D), lambda i: (i, 0)),        # features (f32)
            pl.BlockSpec((H, D), lambda i: (0, 0)),              # w1^T resident
            pl.BlockSpec((H, 1), lambda i: (0, 0)),              # b1 col resident
            pl.BlockSpec((H, 1), lambda i: (0, 0)),              # w2 col resident
            pl.BlockSpec(memory_space=pltpu.MemorySpace.SMEM),   # b2 scalar
            pl.BlockSpec((1, block_b), lambda i: (0, i)),        # labels row tile
        ],
        out_specs=pl.BlockSpec((1, block_b), lambda i: (0, i)),  # lane-dense out
        # No carried accumulator -> batch axis is embarrassingly parallel
        # (uses both TensorCores on v7x; no-op on single-TC v5e/v6e).
        compiler_params=pltpu.CompilerParams(
            dimension_semantics=("parallel",)),
    )(features, w1_hd, b1_col, w2_col, b2_s, y_row)

    # Tiny final reduction (masked pads are exactly 0), done in JAX.
    return jnp.sum(per_elem) / jnp.float32(B)


def _reference_loss(features, labels, w1, b1, w2, b2):
    h = jnp.maximum(features @ w1 + b1, 0.0)
    z = (h @ w2 + b2).reshape(-1)
    y = labels.astype(jnp.float32)
    per = jnp.maximum(z, 0.0) - z * y + jnp.log1p(jnp.exp(-jnp.abs(z)))
    return jnp.mean(per)


if __name__ == "__main__":
    B = 300          # not a multiple of block_b -> exercises tail masking
    D = 32           # bottleneck_dim
    H = 50           # hidden units of the domain classifier
    BLOCK_B = 128    # grid of 3 steps so tiling + masking are actually exercised

    key = jax.random.PRNGKey(0)
    k_feat, k_lab, k_w1, k_b1, k_w2, k_b2 = jax.random.split(key, 6)

    features = jax.random.normal(k_feat, (B, D), dtype=jnp.float32)
    labels = jax.random.bernoulli(k_lab, 0.5, (B,)).astype(jnp.float32)

    # Deterministic params mimicking nn.Linear's uniform(-1/sqrt(fan_in), +).
    lim1 = 1.0 / jnp.sqrt(D)
    w1 = jax.random.uniform(k_w1, (D, H), jnp.float32, -lim1, lim1)
    b1 = jax.random.uniform(k_b1, (H,), jnp.float32, -lim1, lim1)
    lim2 = 1.0 / jnp.sqrt(H)
    w2 = jax.random.uniform(k_w2, (H, 1), jnp.float32, -lim2, lim2)
    b2 = jax.random.uniform(k_b2, (1,), jnp.float32, -lim2, lim2)

    loss = domain_adversarial_loss(features, labels, w1, b1, w2, b2,
                                   block_b=BLOCK_B)
    loss = jax.block_until_ready(loss)

    # Reference on bf16-rounded MXU inputs (kernel casts features/w1 to bf16 on
    # the way into the MXU but accumulates and does all BCE math in f32).
    f_r = features.astype(jnp.bfloat16).astype(jnp.float32)
    w1_r = w1.astype(jnp.bfloat16).astype(jnp.float32)
    ref = _reference_loss(f_r, labels, w1_r, b1, w2, b2)
    assert jnp.allclose(loss, ref, atol=1e-5, rtol=1e-4), (loss, ref)

    # Sanity: still close to the full-f32 forward of the original module.
    ref_f32 = _reference_loss(features, labels, w1, b1, w2, b2)
    assert jnp.allclose(loss, ref_f32, atol=5e-2, rtol=5e-2), (loss, ref_f32)

    print("KERNEL_OK")
</pallas_src>

<mosaic_0001>
module attributes {stable_mosaic.version = 11 : i64} {
  func.func @dann_loss_kernel(%arg0: i32, %arg1: memref<128x32xf32, #tpu.memory_space<vmem>>, %arg2: memref<50x32xbf16, #tpu.memory_space<vmem>>, %arg3: memref<50x1xf32, #tpu.memory_space<vmem>>, %arg4: memref<50x1xf32, #tpu.memory_space<vmem>>, %arg5: memref<1x1xf32, #tpu.memory_space<smem>>, %arg6: memref<1x128xf32, #tpu.memory_space<vmem>>, %arg7: memref<1x128xf32, #tpu.memory_space<vmem>>) attributes {dimension_semantics = [#tpu.dimension_semantics<parallel>], iteration_bounds = array<i64: 3>, scalar_prefetch = 0 : i64, scratch_operands = 0 : i64, tpu.core_type = #tpu.core_type<tc>, window_params = [{transform_indices = @transform_0, window_bounds = array<i64: 128, 32>}, {pipeline_mode = #tpu.pipeline_mode<synchronous>, transform_indices = @transform_1, window_bounds = array<i64: 50, 32>}, {pipeline_mode = #tpu.pipeline_mode<synchronous>, transform_indices = @transform_2, window_bounds = array<i64: 50, 1>}, {pipeline_mode = #tpu.pipeline_mode<synchronous>, transform_indices = @transform_3, window_bounds = array<i64: 50, 1>}, {transform_indices = @transform_4, window_bounds = array<i64: 1, 1>}, {transform_indices = @transform_5, window_bounds = array<i64: 1, 128>}, {transform_indices = @transform_6, window_bounds = array<i64: 1, 128>}]} {
    %c0 = arith.constant 0 : index
    %c0_0 = arith.constant 0 : index
    %0 = vector.load %arg1[%c0, %c0_0] : memref<128x32xf32, #tpu.memory_space<vmem>>, vector<128x32xf32>
    %1 = arith.truncf %0 : vector<128x32xf32> to vector<128x32xbf16>
    %c0_1 = arith.constant 0 : index
    %c0_2 = arith.constant 0 : index
    %2 = vector.load %arg2[%c0_1, %c0_2] : memref<50x32xbf16, #tpu.memory_space<vmem>>, vector<50x32xbf16>
    %cst = arith.constant dense<0.000000e+00> : vector<50x128xf32>
    %3 = tpu.matmul %2, %1, %cst {dimension_numbers = #tpu.dot_dimension_numbers<[1], [1], [0], [0], [0, 0, 1, 0], [], []>} : vector<50x32xbf16>, vector<128x32xbf16>, vector<50x128xf32> -> vector<50x128xf32>
    %c0_3 = arith.constant 0 : index
    %c0_4 = arith.constant 0 : index
    %4 = vector.load %arg3[%c0_3, %c0_4] : memref<50x1xf32, #tpu.memory_space<vmem>>, vector<50x1xf32>
    %5 = vector.broadcast %4 : vector<50x1xf32> to vector<50x128xf32>
    %6 = arith.addf %3, %5 : vector<50x128xf32>
    %cst_5 = arith.constant 0.000000e+00 : f32
    %7 = vector.broadcast %cst_5 : f32 to vector<50x128xf32>
    %8 = arith.maximumf %6, %7 : vector<50x128xf32>
    %c0_6 = arith.constant 0 : index
    %c0_7 = arith.constant 0 : index
    %9 = vector.load %arg4[%c0_6, %c0_7] : memref<50x1xf32, #tpu.memory_space<vmem>>, vector<50x1xf32>
    %10 = vector.broadcast %9 : vector<50x1xf32> to vector<50x128xf32>
    %11 = arith.mulf %8, %10 : vector<50x128xf32>
    %cst_8 = arith.constant dense<0.000000e+00> : vector<128xf32>
    %12 = vector.multi_reduction <add>, %11, %cst_8 [0] : vector<50x128xf32> to vector<128xf32>
    %13 = vector.shape_cast %12 : vector<128xf32> to vector<1x128xf32>
    %c0_9 = arith.constant 0 : index
    %c0_10 = arith.constant 0 : index
    %14 = memref.load %arg5[%c0_9, %c0_10] : memref<1x1xf32, #tpu.memory_space<smem>>
    %15 = vector.broadcast %14 : f32 to vector<1x128xf32>
    %16 = arith.addf %13, %15 : vector<1x128xf32>
    %c0_11 = arith.constant 0 : index
    %c0_12 = arith.constant 0 : index
    %17 = vector.load %arg6[%c0_11, %c0_12] : memref<1x128xf32, #tpu.memory_space<vmem>>, vector<1x128xf32>
    %cst_13 = arith.constant 0.000000e+00 : f32
    %18 = vector.broadcast %cst_13 : f32 to vector<1x128xf32>
    %19 = arith.maximumf %16, %18 : vector<1x128xf32>
    %20 = arith.mulf %16, %17 : vector<1x128xf32>
    %21 = arith.subf %19, %20 : vector<1x128xf32>
    %22 = math.absf %16 : vector<1x128xf32>
    %cst_14 = arith.constant 0.000000e+00 : f32
    %23 = vector.broadcast %cst_14 : f32 to vector<1x128xf32>
    %24 = arith.subf %23, %22 : vector<1x128xf32>
    %25 = math.exp %24 : vector<1x128xf32>
    %26 = math.log1p %25 : vector<1x128xf32>
    %27 = arith.addf %21, %26 : vector<1x128xf32>
    %c128_i32 = arith.constant 128 : i32
    %28 = arith.muli %arg0, %c128_i32 : i32
    %29 = tpu.iota {dimensions = array<i32: 1>} : vector<1x128xi32>
    %30 = vector.broadcast %28 : i32 to vector<1x128xi32>
    %31 = arith.addi %30, %29 : vector<1x128xi32>
    %c300_i32 = arith.constant 300 : i32
    %32 = vector.broadcast %c300_i32 : i32 to vector<1x128xi32>
    %33 = arith.cmpi slt, %31, %32 : vector<1x128xi32>
    %cst_15 = arith.constant 0.000000e+00 : f32
    %34 = vector.broadcast %cst_15 : f32 to vector<1x128xf32>
    %35 = arith.select %33, %27, %34 : vector<1x128xi1>, vector<1x128xf32>
    %c0_16 = arith.constant 0 : index
    %c0_17 = arith.constant 0 : index
    %36 = vector.load %arg7[%c0_16, %c0_17] : memref<1x128xf32, #tpu.memory_space<vmem>>, vector<1x128xf32>
    tpu.vector_store %arg7[%c0_16, %c0_17], %35 {strides = array<i32>} : memref<1x128xf32, #tpu.memory_space<vmem>>, vector<1x128xf32>,
    return
  }
  func.func @transform_0(%arg0: i32) -> (i32, i32) {
    %c0_i32 = arith.constant 0 : i32
    %c0_i32_0 = arith.constant 0 : i32
    return %arg0, %c0_i32 : i32, i32
  }
  func.func @transform_1(%arg0: i32) -> (i32, i32) {
    %c0_i32 = arith.constant 0 : i32
    %c0_i32_0 = arith.constant 0 : i32
    %c0_i32_1 = arith.constant 0 : i32
    return %c0_i32, %c0_i32_0 : i32, i32
  }
  func.func @transform_2(%arg0: i32) -> (i32, i32) {
    %c0_i32 = arith.constant 0 : i32
    %c0_i32_0 = arith.constant 0 : i32
    %c0_i32_1 = arith.constant 0 : i32
    return %c0_i32, %c0_i32_0 : i32, i32
  }
  func.func @transform_3(%arg0: i32) -> (i32, i32) {
    %c0_i32 = arith.constant 0 : i32
    %c0_i32_0 = arith.constant 0 : i32
    %c0_i32_1 = arith.constant 0 : i32
    return %c0_i32, %c0_i32_0 : i32, i32
  }
  func.func @transform_4(%arg0: i32) -> (i32, i32) {
    %c0_i32 = arith.constant 0 : i32
    %c0_i32_0 = arith.constant 0 : i32
    %c0_i32_1 = arith.constant 0 : i32
    return %c0_i32, %c0_i32_0 : i32, i32
  }
  func.func @transform_5(%arg0: i32) -> (i32, i32) {
    %c0_i32 = arith.constant 0 : i32
    %c0_i32_0 = arith.constant 0 : i32
    return %c0_i32, %arg0 : i32, i32
  }
  func.func @transform_6(%arg0: i32) -> (i32, i32) {
    %c0_i32 = arith.constant 0 : i32
    %c0_i32_0 = arith.constant 0 : i32
    return %c0_i32, %arg0 : i32, i32
  }
}

</mosaic_0001>

<bundles_post_ra>
// kernel: tpu_custom_call.1
= control target key start
LH: loop header
LB: loop body
LE: loop exit
PB: predicated region body
PF: predicated region fallthrough
CT: control target
= control target key end

     0   :  { %s1104_s0 = inlined_call_operand.vmem [shape: f32[300,32], index: 0, kind: input, shape index: {}]   ;;  %s1105_s1 = inlined_call_operand.vmem [shape: bf16[50,32], index: 1, kind: input, shape index: {}]   ;;  %s1106_s2 = inlined_call_operand.vmem [shape: f32[50,1], index: 2, kind: input, shape index: {}]   ;;  %s1107_s3 = inlined_call_operand.vmem [shape: f32[50,1], index: 3, kind: input, shape index: {}]   ;;  %s1108_s4 = inlined_call_operand.<no memory space> [shape: f32[1,1], index: 4, kind: input, shape index: {}]   ;;  %s1109_s5 = inlined_call_operand.vmem [shape: f32[1,300], index: 5, kind: input, shape index: {}]   ;;  %s1110_s6 = inlined_call_operand.hbm [shape: f32[1,384], index: 6, kind: output, shape index: {}]  }
   0x1   :  { %11 = sst [smem:[#allocation2]] %s1108_s4 }
   0x2   :  { %12 = vsyncpa [#allocation4], 0 }
   0x3   :  { %14 = vsyncpa [#allocation4 + $0x1], 0  ;;  %s895_s23 = smov 0   ;;  %s897_s24 = smov 0  }
   0x4   :  { %s899_s25 = smov 0   ;;  %s901_s26 = smov 0  }
   0x5 LB: > { %s916_s4 = sadd.s32 4294967295, %s853_s26   ;;  %s655_s27 = sadd.s32 4294967294, %s853_s26   ;;  %s853_s26 = sphi %s901_s26, %s1116_s26   ;;  %s849_s25 = sphi %s899_s25, %s1115_s25   ;;  %s845_s24 = sphi %s897_s24, %s1114_s24   ;;  %s841_s23 = sphi %s895_s23, %s1113_s23  }
   0x6   : > { %s920_s28 = sadd.s32 1, %s853_s26   ;;  %s163_s29 = sadd.s32 1, %s849_s25 }
   0x7   : > { %s160_s30 = ssub.s32 %s853_s26, %s920_s28  ;;  %p173_p0 = scmp.ne.s32.totalorder %s849_s25, %s845_s24 }
   0x8   : > { %p161_p1 = scmp.eq.s32.totalorder %s160_s30, 0  ;;  %p174_p2 = scmp.eq.s32.totalorder %s916_s4, 2 }
   0x9   : > { %p179_p3 = scmp.ne.s32.totalorder %s845_s24, %s841_s23  ;;  %p180_p4 = scmp.eq.s32.totalorder %s655_s27, 2 }
   0xa   : > { %s931_s7 = scalar_select %p161_p1, %s849_s25, %s163_s29  }
   0xb   : > { %p933_p5 = por %p174_p2, %p173_p0  ;;  %p937_p6 = por %p180_p4, %p179_p3 }
   0xc   : > { %p658_p7 = scmp.ge.s32.totalorder %s853_s26, 1  ;;  %p233_p8 = scmp.lt.s32.totalorder %s853_s26, 4 }
   0xe   : > { %p234_p9 = pnand %p658_p7, %p233_p8 }
   0xf   : > { %s944_s10 = sshll.u32 (!%p234_p9), %s916_s4, 4  ;;  %vm378_vm0 = vcmask (!%p234_p9), 261120   ;;  %v783_v0 = vld [vmem:[%s1105_s1] sm:$0xff] (!%p234_p9)   ;;  %v784_v1 = vld [vmem:[%s1105_s1 + $0x10] sm:$0xff] (!%p234_p9)   ;;  %v855_v2 = vmov (!%p234_p9), 0   ;;  %v319_v5 = vld [vmem:[%s1106_s2 + $0x8] sm:$0xff] (!%p234_p9) }
  0x10   : > { %237 = sbr.rel (%p234_p9) target bundleno = 391 (0x187), region = 44  ;;  %p274_p10 = scmp.lt.s32.totalorder (!%p234_p9), %s944_s10, 37  ;;  %701 = vmatprep.mubr.msk.bf16.mxu0 (!%p234_p9), %vm378_vm0, %v783_v0  ;;  %781 = vset.pattern.permute.xlu0 (!%p234_p9), %v855_v2  ;;  %v318_v3 = vld [vmem:[%s1106_s2] sm:$0xff] (!%p234_p9)  ;;  %v320_v4 = vld [vmem:[%s1106_s2 + $0x10] sm:$0xff] (!%p234_p9)  ;;  %v321_v6 = vld [vmem:[%s1106_s2 + $0x18] sm:$0xff] (!%p234_p9)  ;;  %vm540_vm1 = vcmask (!%p234_p9), 1041408  }
  0x11   : > { %705 = vmatprep.mubr.msk.bf16.mxu1 (!%p234_p9), %vm378_vm0, %v784_v1  ;;  %782 = vset.pattern.permute.xlu1 (!%p234_p9), %v855_v2  ;;  %v486_v14 = vld [vmem:[%s1107_s3] sm:$0xff] (!%p234_p9)  ;;  %v487_v15 = vld [vmem:[%s1107_s3 + $0x8] sm:$0xff] (!%p234_p9)  ;;  %v488_v19 = vld [vmem:[%s1107_s3 + $0x10] sm:$0xff] (!%p234_p9)  ;;  %p283_p11 = scmp.lt.s32.totalorder (!%p234_p9), %s916_s4, 2  ;;  %s669_s13 = sshll.u32 (!%p234_p9), %s916_s4, 7 }
  0x12   : > { %327 = vperm.xlu0 (!%p234_p9), %781, %v318_v3   ;;  %337 = vperm.xlu1 (!%p234_p9), %782, %v320_v4   ;;  %v322_v18 = vld [vmem:[%s1106_s2 + $0x20] sm:$0xff] (!%p234_p9)  ;;  %v323_v22 = vld [vmem:[%s1106_s2 + $0x28] sm:$0xff] (!%p234_p9)  ;;  %v489_v23 = vld [vmem:[%s1107_s3 + $0x18] sm:$0xff] (!%p234_p9)  ;;  %s267_s14 = sand.u32 (!%p234_p9), 1, %s845_s24   ;;  %s1062_s18 = scalar_lea.hbm (!%p234_p9), %s1110_s6, %s944_s10 }
  0x13   : > { %v324_v26 = vld [vmem:[%s1106_s2 + $0x30] sm:$0x3] (!%p234_p9)  ;;  %v490_v27 = vld [vmem:[%s1107_s3 + $0x20] sm:$0xff] (!%p234_p9)  ;;  %v491_v30 = vld [vmem:[%s1107_s3 + $0x28] sm:$0xff] (!%p234_p9)  ;;  %s579_s19 = scalar_lea.sflag (!%p234_p9), [#allocation4], %s267_s14  ;;  %s856_s21 = smov (!%p234_p9), [#allocation3]  }
  0x14   : > { %v492_v31 = vld [vmem:[%s1107_s3 + $0x30] sm:$0x3] (!%p234_p9)  ;;  %v785_v49 = vld [vmem:[%s1105_s1 + $0x8] sm:$0xff] (!%p234_p9)   ;;  %v786_v50 = vld [vmem:[%s1105_s1 + $0x18] ss:$0 sps:$4 sm:$0x11] (!%p234_p9)  }
  0x15   : > { %s795_s22 = sshll.u32 (!%p234_p9), %s856_s21, 4  ;;  %s796_s22 = int_to_ptr.vmem [resolvable:$false] %s795_s22 }
  0x16   : > { %332 = vperm.xlu0 (!%p234_p9), %781, %v319_v5   ;;  %342 = vperm.xlu1 (!%p234_p9), %782, %v321_v6  }
  0x17   : > { %s275_s15 = scalar_select %p274_p10, %s944_s10, 37 }
  0x18   : > { %s284_s29 = scalar_select %p283_p11, %s916_s4, 2 }
  0x19   : > { %s660_s20 = sshll.u32 %s275_s15, 3  ;;  %s268_s15 = scalar_lea.vmem [#allocation3], %s267_s14 }
  0x1a   : > { %s965_s27 = scalar_lea.vmem %s1104_s0, %s660_s20  ;;  %495 = vperm.xlu0 %781, %v486_v14   ;;  %500 = vperm.xlu1 %782, %v487_v15   ;;  %s285_s12 = scalar_lea.vmem %s1109_s5, %s284_s29 }
  0x1b   : > { %v287_v7 = vld [vmem:[%s965_s27] sm:$0xff]  ;;  %v288_v8 = vld [vmem:[%s965_s27 + $0x8] sm:$0xff]  ;;  %v289_v9 = vld [vmem:[%s965_s27 + $0x10] sm:$0xff]  ;;  %s591_s16 = sshll.u32 %s268_s15, 4  ;;  %s1064_s16 = int_to_ptr.vmem [resolvable:$true] %s591_s16 }
  0x1c   : > { %v303_v10 = vpack.c.bf16 %v288_v8, %v287_v7  ;;  %v290_v11 = vld [vmem:[%s965_s27 + $0x18] sm:$0xff]  ;;  %v291_v16 = vld [vmem:[%s965_s27 + $0x20] sm:$0xff]  ;;  %v292_v17 = vld [vmem:[%s965_s27 + $0x28] sm:$0xff]  ;;  %s791_s20 = scalar_lea.vmem %s1064_s16, 16  ;;  %p798_p1 = scmp.lt.s32.totalorder %s1064_s16, %s796_s22 }
  0x1d   : > { %v304_v12 = vpack.c.bf16 %v290_v11, %v289_v9  ;;  %v305_v21 = vpack.c.bf16 %v292_v17, %v291_v16  ;;  %v293_v24 = vld [vmem:[%s965_s27 + $0x30] sm:$0xff]  ;;  %v294_v25 = vld [vmem:[%s965_s27 + $0x38] sm:$0xff]  ;;  %v295_v32 = vld [vmem:[%s965_s27 + $0x40] sm:$0xff]  ;;  %p792_p12 = scmp.ne.s32.totalorder %s1064_s16, %s791_s20 }
  0x1e   : > { %725 = vmatprep.subr.msk.bf16.mxu0 %vm378_vm0, %v303_v10  ;;  %726 = vmatprep.subr.msk.bf16.mxu1 %vm378_vm0, %v303_v10  ;;  %v392_v13 = vsel %vm378_vm0, %v303_v10, 0  ;;  %v306_v29 = vpack.c.bf16 %v294_v25, %v293_v24  ;;  %v296_v33 = vld [vmem:[%s965_s27 + $0x48] sm:$0xff]  ;;  %v297_v36 = vld [vmem:[%s965_s27 + $0x50] sm:$0xff]  ;;  %v298_v37 = vld [vmem:[%s965_s27 + $0x58] sm:$0xff] }
  0x1f   : > { %686 = vmatpush3.bf16.xpose.msra.mxu0 %v392_v13  ;;  %717 = vmatpush3.bf16.xpose.msra.mxu1 %v392_v13  ;;  %v395_v20 = vsel %vm378_vm0, %v304_v12, 0  ;;  %v398_v28 = vsel %vm378_vm0, %v305_v21, 0  ;;  %v307_v35 = vpack.c.bf16 %v296_v33, %v295_v32  ;;  %v308_v39 = vpack.c.bf16 %v298_v37, %v297_v36  ;;  %v299_v40 = vld [vmem:[%s965_s27 + $0x60] sm:$0xff]  ;;  %v300_v41 = vld [vmem:[%s965_s27 + $0x68] sm:$0xff]  ;;  %v301_v44 = vld [vmem:[%s965_s27 + $0x70] sm:$0xff]  ;;  %p793_p13 = pnand %p792_p12, %p933_p5 }
  0x20   : > { %727 = vmatprep.subr.msk.bf16.mxu0 %vm378_vm0, %v304_v12  ;;  %728 = vmatprep.subr.msk.bf16.mxu1 %vm378_vm0, %v304_v12  ;;  %v401_v34 = vsel %vm378_vm0, %v306_v29, 0  ;;  %v309_v43 = vpack.c.bf16 %v300_v41, %v299_v40  ;;  %v302_v45 = vld [vmem:[%s965_s27 + $0x78] sm:$0xff]  ;;  %s549_s27 = sld [smem:[#allocation2]] }
  0x21   : > { %347 = vperm.xlu0 %781, %v322_v18   ;;  %505 = vperm.xlu1 %782, %v488_v19   ;;  %v404_v38 = vsel %vm378_vm0, %v307_v35, 0  ;;  %v407_v42 = vsel %vm378_vm0, %v308_v39, 0  ;;  %v310_v47 = vpack.c.bf16 %v302_v45, %v301_v44  ;;  %p794_p0 = pneg %p793_p13 }
  0x22   : > { %v410_v46 = vsel %vm378_vm0, %v309_v43, 0 }
  0x23   : > { %v413_v48 = vsel %vm378_vm0, %v310_v47, 0 }
  0x25   : > { %352 = vperm.xlu0 %781, %v323_v22   ;;  %510 = vperm.xlu1 %782, %v489_v23  }
  0x27   : > { %688 = vmatpush3.bf16.xpose.msra.mxu0 %v395_v20  ;;  %718 = vmatpush3.bf16.xpose.msra.mxu1 %v395_v20 }
  0x28   : > { %729 = vmatprep.subr.msk.bf16.mxu0 %vm378_vm0, %v305_v21  ;;  %730 = vmatprep.subr.msk.bf16.mxu1 %vm378_vm0, %v305_v21 }
  0x29   : > { %357 = vperm.xlu0 %781, %v324_v26   ;;  %515 = vperm.xlu1 %782, %v490_v27  }
  0x2d   : > { %520 = vperm.xlu0 %781, %v491_v30   ;;  %525 = vperm.xlu1 %782, %v492_v31  }
  0x2f   : > { %690 = vmatpush3.bf16.xpose.msra.mxu0 %v398_v28  ;;  %719 = vmatpush3.bf16.xpose.msra.mxu1 %v398_v28 }
  0x30   : > { %731 = vmatprep.subr.msk.bf16.mxu0 %vm378_vm0, %v306_v29  ;;  %732 = vmatprep.subr.msk.bf16.mxu1 %vm378_vm0, %v306_v29 }
  0x37   : > { %692 = vmatpush3.bf16.xpose.msra.mxu0 %v401_v34  ;;  %720 = vmatpush3.bf16.xpose.msra.mxu1 %v401_v34 }
  0x38   : > { %733 = vmatprep.subr.msk.bf16.mxu0 %vm378_vm0, %v307_v35  ;;  %734 = vmatprep.subr.msk.bf16.mxu1 %vm378_vm0, %v307_v35 }
  0x3f   : > { %694 = vmatpush3.bf16.xpose.msra.mxu0 %v404_v38  ;;  %721 = vmatpush3.bf16.xpose.msra.mxu1 %v404_v38 }
  0x40   : > { %735 = vmatprep.subr.msk.bf16.mxu0 %vm378_vm0, %v308_v39  ;;  %736 = vmatprep.subr.msk.bf16.mxu1 %vm378_vm0, %v308_v39 }
  0x47   : > { %696 = vmatpush3.bf16.xpose.msra.mxu0 %v407_v42  ;;  %722 = vmatpush3.bf16.xpose.msra.mxu1 %v407_v42  ;;  %v550_v42 = vstv %s549_s27  ;;  %s797_s27 = scalar_lea.vmem %s796_s22, 32 }
  0x48   : > { %737 = vmatprep.subr.msk.bf16.mxu0 %vm378_vm0, %v309_v43  ;;  %738 = vmatprep.subr.msk.bf16.mxu1 %vm378_vm0, %v309_v43  ;;  %p799_p2 = scmp.lt.s32.totalorder %s797_s27, %s791_s20 }
  0x4a   : > { %p800_p3 = por %p799_p2, %p798_p1 }
  0x4c   : > { %p801_p4 = pnand %p800_p3, %p794_p0 }
  0x4f   : > { %698 = vmatpush3.bf16.xpose.msra.mxu0 %v410_v46  ;;  %723 = vmatpush3.bf16.xpose.msra.mxu1 %v410_v46 }
  0x50   : > { %739 = vmatprep.subr.msk.bf16.mxu0 %vm378_vm0, %v310_v47  ;;  %740 = vmatprep.subr.msk.bf16.mxu1 %vm378_vm0, %v310_v47 }
  0x57   : > { %700 = vmatpush3.bf16.xpose.msra.mxu0 %v413_v48  ;;  %724 = vmatpush3.bf16.xpose.msra.mxu1 %v413_v48 }
  0x5e   : > { %702 = vmatmul.mubr.msk.bf16.vlgmr.msra.gmra.mrb[0].mxu0 %vm378_vm0, %v785_v49  ;;  %706 = vmatmul.mubr.msk.bf16.vlgmr.msra.gmra.mrb[0].mxu1 %vm378_vm0, %v786_v50  ;;  %v571_v50 = vlaneseq }
  0x91   : > { %v328_v51 = vpop.permute.xlu0 %327  ;;  %v338_v52 = vpop.permute.xlu1 %337 }
  0x95   : > { %v333_v53 = vpop.permute.xlu0 %332  ;;  %v343_v54 = vpop.permute.xlu1 %342 }
  0x99   : > { %v496_v55 = vpop.permute.xlu0 %495  ;;  %v501_v56 = vpop.permute.xlu1 %500 }
  0xa0   : > { %v348_v57 = vpop.permute.xlu0 %347  ;;  %v506_v58 = vpop.permute.xlu1 %505 }
  0xa4   : > { %v353_v59 = vpop.permute.xlu0 %352  ;;  %v511_v60 = vpop.permute.xlu1 %510 }
  0xa8   : > { %v358_v10 = vpop.permute.xlu0 %357  ;;  %v516_v15 = vpop.permute.xlu1 %515 }
  0xac   : > { %v526_v27 = vpop.permute.xlu1 %525  ;;  %v521_v30 = vpop.permute.xlu0 %520 }
 0x131   : > { %v703_v61 = vpop.f32.mrb[0].mxu0  ;;  %v707_v62 = vpop.f32.mrb[0].mxu1 }
 0x132   : > { %v449_v63 = vpop.f32.mrb[1].mxu0  ;;  %v465_v0 = vpop.f32.mrb[1].mxu1  ;;  %v458_v1 = vadd.f32 %v703_v61, %v338_v52  ;;  %v474_v14 = vadd.f32 %v707_v62, %v358_v10  ;;  %v552_v52 = vld [vmem:[%s285_s12] sm:$0x1] }
 0x133   : > { %v450_v2 = vadd.f32 %v449_v63, %v328_v51  ;;  %v704_v3 = vpop.f32.mrb[2].mxu0  ;;  %v708_v4 = vpop.f32.mrb[2].mxu1  ;;  %v466_v12 = vadd.f32 %v465_v0, %v348_v57 }
 0x134   : > { %v452_v5 = vpop.f32.mrb[3].mxu0  ;;  %v468_v6 = vpop.f32.mrb[3].mxu1  ;;  %v461_v8 = vadd.f32 %v704_v3, %v343_v54  ;;  %v481_v11 = vmax.f32 %v458_v1, 0.0  ;;  %v485_v23 = vmax.f32 %v474_v14, 0.0  ;;  %v573_v54 = vstv %s669_s13 }
 0x135   : > { %v479_v7 = vmax.f32 %v450_v2, 0.0  ;;  %v453_v9 = vadd.f32 %v452_v5, %v333_v53  ;;  %v469_v19 = vadd.f32 %v468_v6, %v353_v59  ;;  %v483_v21 = vmax.f32 %v466_v12, 0.0 }
 0x136   : > { %v482_v17 = vmax.f32 %v461_v8, 0.0  ;;  %v530_v20 = vmul.f32 %v506_v58, %v481_v11  ;;  %v534_v31 = vmul.f32 %v526_v27, %v485_v23  ;;  %v572_v53 = vand.u32 127, %v571_v50 }
 0x137   : > { %v480_v13 = vmax.f32 %v453_v9, 0.0  ;;  %v528_v16 = vmul.f32 %v496_v55, %v479_v7  ;;  %v484_v26 = vmax.f32 %v469_v19, 0.0  ;;  %v532_v28 = vmul.f32 %v516_v15, %v483_v21 }
 0x138   : > { %v531_v24 = vmul.f32 %v511_v60, %v482_v17  ;;  %v541_v35 = vsel %vm540_vm1, %v534_v31, 0.0  ;;  %v574_v59 = vadd.s32 %v573_v54, %v572_v53 }
 0x139   : > { %v529_v18 = vmul.f32 %v501_v56, %v480_v13  ;;  %v533_v32 = vmul.f32 %v521_v30, %v484_v26 }
 0x13a   : > { %vm575_vm3 = vcmp.lt.s32.totalorder %v574_v59, 300 }
 0x13b   : > { %v535_v22 = vadd.f32 %v529_v18, %v528_v16 }
 0x13d   : > { %v536_v25 = vadd.f32 %v535_v22, %v530_v20 }
 0x13f   : > { %v537_v29 = vadd.f32 %v536_v25, %v531_v24 }
 0x141   : > { %v538_v33 = vadd.f32 %v537_v29, %v532_v28 }
 0x143   : > { %v539_v34 = vadd.f32 %v538_v33, %v533_v32 }
 0x145   : > { %v542_v36 = vadd.f32 %v541_v35, %v539_v34 }
 0x147   : > { %v543_v37 = vrot.slane %v542_v36, 4 }
 0x149   : > { %v544_v38 = vadd.f32 %v543_v37, %v542_v36 }
 0x14b   : > { %v545_v39 = vrot.slane %v544_v38, 2 }
 0x14d   : > { %v546_v40 = vadd.f32 %v545_v39, %v544_v38 }
 0x14f   : > { %v547_v41 = vrot.slane %v546_v40, 1 }
 0x151   : > { %v548_v43 = vadd.f32 %v547_v41, %v546_v40 }
 0x153   : > { %v551_v44 = vadd.f32 %v550_v42, %v548_v43 }
 0x155   : > { %v556_v45 = vand.u32 2147483647, %v551_v44  ;;  %v553_v56 = vmax.f32 %v551_v44, 0.0  ;;  %v554_v57 = vmul.f32 %v552_v52, %v551_v44 }
 0x157   : > { %v557_v46 = vsub.f32 0.0, %v556_v45  ;;  %v555_v63 = vsub.f32 %v553_v56, %v554_v57 }
 0x159   : > { %v558_v47 = vmul.f32 1.442695, %v557_v46 }
 0x15b   : > { %787 = vpow2.f32 %v558_v47 }
 0x165   : > { %v788_v48 = vpop.eup %787 }
 0x166   : > { %v560_v49 = vadd.f32 1.0, %v788_v48  ;;  %v563_v51 = vmul.f32 -0.5, %v788_v48  ;;  %v566_v58 = vand.u32 2147483647, %v788_v48 }
 0x168   : > { %789 = vlog2.f32 %v560_v49  ;;  %v564_v55 = vadd.f32 1.0, %v563_v51  ;;  %vm567_vm2 = vcmp.lt.f32.partialorder %v566_v58, 0.0004427343 }
 0x16a   : > { %v565_v62 = vmul.f32 %v788_v48, %v564_v55 }
 0x172   : > { %v790_v60 = vpop.eup %789 }
 0x173   : > { %v562_v61 = vmul.f32 0.6931472, %v790_v60 }
 0x175   : > { %v568_v0 = vsel %vm567_vm2, %v565_v62, %v562_v61 }
 0x176   : > { %v569_v1 = vadd.f32 %v568_v0, %v555_v63 }
 0x178   : > { %v576_v2 = vsel %vm575_vm3, %v569_v1, 0.0 }
 0x179   : > { %577 = vst [vmem:[%s268_s15] sm:$0x1] %v576_v2 }
 0x17a   : > { %804 = shalt.err (!%p801_p4)
}
 0x17b   : > { %s805_s10 = scalar_lea.hbm %s1062_s18, 16  ;;  %s809_s11 = scalar_lea.hbm %s1110_s6, 48 }
 0x17c   : > { %p806_p7 = scmp.ne.s32.totalorder %s1062_s18, %s805_s10  ;;  %p810_p10 = scmp.lt.u32.totalorder %s1062_s18, %s1110_s6 }
 0x17d   : > { %p811_p11 = scmp.lt.u32.totalorder %s809_s11, %s805_s10  ;;  %p813_p13 = scmp.lt.u32.totalorder %s805_s10, %s1062_s18 }
 0x17e   : > { %p807_p8 = pnand %p806_p7, %p933_p5 }
 0x17f   : > { %p812_p12 = por %p811_p11, %p810_p10 }
 0x180   : > { %p808_p9 = pneg %p807_p8 }
 0x181   : > { %p814_p0 = por %p813_p13, %p812_p12 }
 0x183   : > { %p815_p1 = pnand %p814_p0, %p808_p9 }
 0x185   : > { %818 = shalt.err (!%p815_p1)
}
 0x186   : > { %741 = dma.vmem_to_hbm [thread:$0]  (%p933_p5), %s1064_s16, 16, %s1062_s18, %s579_s19  }
 0x187 PF: > { %p747_p2 = scmp.ge.s32.totalorder %s853_s26, 2  ;;  %s603_s14 = sand.u32 1, %s841_s23  }
 0x188   : > { %s604_s15 = scalar_lea.sflag [#allocation4], %s603_s14 }
 0x189   : > { %p744_p3 = pnand %p747_p2, %p937_p6 }
 0x18b   : > { %836 = dma.done.wait (!%p744_p3), %s604_s15, 16  }
 0x18c   : > { %838 = vsyncadd (!%p744_p3), %s604_s15, 4294967280  ;;  %p17_p4 = scmp.ge.s32.totalorder %s920_s28, 5   ;;  %s1113_s23 = smov %s845_s24 }
 0x18d   : > { %s1114_s24 = smov %s849_s25  ;;  %s1115_s25 = smov %s931_s7 }
 0x18e   : > { %s1116_s26 = smov %s920_s28  ;;  %19 = sbr.rel (!%p17_p4) target bundleno = 5 (0x5), region = 82 }
 0x195   :  { %608 = vsyncpa [#allocation4], 1 }
 0x196   :  { %610 = vsyncpa [#allocation4 + $0x1], 1 }

</bundles_post_ra>
